<compile_context>
chip_gen: v7x
topology: tpu7x:2x2x1
jax: 0.10.0
libtpu: 0.0.40
codegen_flags: <defaults>
</compile_context>

<pallas_src>
import functools

import jax
import jax.numpy as jnp
from jax.experimental import pallas as pl
from jax.experimental.pallas import tpu as pltpu


def _ordinal_kernel(x_ref, logp_ref, disp_ref, *, min_depth, max_depth):
    # x_ref:    (NB, C, TN)  logits, channels on sublanes, pixels on lanes
    # logp_ref: (NB, C, TN)  log_softmax output
    # disp_ref: (NB, 1, TN)  1 / expected-depth output (lane-dense)
    x = x_ref[...].astype(jnp.float32)
    C = x.shape[1]

    # Numerically stable softmax pieces along the channel (sublane) axis.
    m = jnp.max(x, axis=1, keepdims=True)              # (NB, 1, TN)  XLU reduce
    shifted = x - m
    e = jnp.exp(shifted)                               # EUP
    s = jnp.sum(e, axis=1, keepdims=True)              # (NB, 1, TN)
    logp_ref[...] = (shifted - jnp.log(s)).astype(logp_ref.dtype)

    # labels = linspace(min_depth, max_depth, C), built in-kernel (no DMA).
    step = (max_depth - min_depth) / (C - 1) if C > 1 else 0.0
    iota = jax.lax.broadcasted_iota(jnp.int32, (1, C, 1), 1).astype(jnp.float32)
    labels = min_depth + iota * step                    # (1, C, 1)

    # depth = sum(softmax(x) * labels) = wsum / s  =>  disp = 1/depth = s/wsum
    # Exact division (only a (NB, 1, TN) row -> negligible cost).
    wsum = jnp.sum(e * labels, axis=1, keepdims=True)   # (NB, 1, TN)
    disp_ref[...] = (s / wsum).astype(disp_ref.dtype)


def _round_up(v, m):
    return (v + m - 1) // m * m


def _vmem_capacity_bytes():
    """Per-TensorCore physical VMEM; falls back to the smallest current gen."""
    try:
        cap = int(pltpu.get_tpu_info().vmem_capacity_bytes)
        if cap > 0:
            return cap
    except Exception:  # query unavailable -> conservative default
        pass
    return 64 * 1024 * 1024   # v7x per-TC size: safe bound on every generation


def _choose_blocks(N, C, HW, vmem_budget):
    """Pick (NB, TN): batch rows and lane-dense columns per grid step."""
    # f32 bytes per (batch-row x column) of the working set:
    #   2 pipeline buffers x (x block + logp block) + 2 x disp row
    #   + ~3 full (C, TN) in-kernel temporaries (x cast, shifted, e)
    #   + small (1, TN) rows (m, s, wsum, disp)
    bytes_per_col = 4 * (7 * C + 8)

    tn_cap = max(128, (vmem_budget // bytes_per_col) // 128 * 128)

    if _round_up(HW, 128) <= tn_cap:
        # Whole pixel row fits in one block; block over batch too so each grid
        # step still moves multi-MiB (amortizes the ~0.35 us/step overhead).
        tn = HW
        per_row = bytes_per_col * _round_up(HW, 128)
        target_step_bytes = 4 * 1024 * 1024
        nb = max(1, min(N,
                        vmem_budget // per_row,
                        -(-target_step_bytes // per_row)))
        # Keep enough batch-grid steps so v7x's two TensorCores both get work.
        min_steps = 4
        nb = min(nb, max(1, N // min(min_steps, N)))
    else:
        # Row too big for one block: lane-dense multiple of 128; ragged last
        # block is handled by a cdiv grid (no divide-exactly requirement).
        tn = tn_cap
        nb = 1

    # If the grid collapsed to very few steps and the row is big, split columns.
    min_steps = 4
    steps = pl.cdiv(N, nb) * pl.cdiv(HW, tn)
    if steps < min_steps and tn > 512:
        want_cols = -(-min_steps // pl.cdiv(N, nb))
        tn = max(128, _round_up(-(-HW // want_cols), 128))

    return nb, tn


def ordinal_regression_forward(x, ord_num, max_depth, min_depth):
    """x: (N, C, H, W) with C == ord_num. Returns (log_prob NCHW, disp NHW)."""
    N, C, H, W = x.shape
    assert C == ord_num
    HW = H * W

    vmem_cap = _vmem_capacity_bytes()
    vmem_limit = int(vmem_cap * 0.8)        # explicit limit > scoped default
    block_budget = int(vmem_cap * 0.55)     # headroom for Mosaic internals
    NB, TN = _choose_blocks(N, C, HW, block_budget)

    # NCHW -> (N, C, HW): free view, channels land on sublanes, pixels on lanes.
    x3 = x.reshape(N, C, HW)

    kernel = functools.partial(
        _ordinal_kernel, min_depth=float(min_depth), max_depth=float(max_depth)
    )

    grid = (pl.cdiv(N, NB), pl.cdiv(HW, TN))
    logp3, disp3 = pl.pallas_call(
        kernel,
        out_shape=(
            jax.ShapeDtypeStruct((N, C, HW), x.dtype),
            jax.ShapeDtypeStruct((N, 1, HW), x.dtype),
        ),
        grid_spec=pltpu.PrefetchScalarGridSpec(
            num_scalar_prefetch=0,
            grid=grid,
            in_specs=[
                pl.BlockSpec((NB, C, TN), lambda n, j: (n, 0, j)),
            ],
            out_specs=[
                pl.BlockSpec((NB, C, TN), lambda n, j: (n, 0, j)),
                pl.BlockSpec((NB, 1, TN), lambda n, j: (n, 0, j)),
            ],
        ),
        compiler_params=pltpu.CompilerParams(
            dimension_semantics=("parallel", "parallel"),
            vmem_limit_bytes=vmem_limit,
        ),
    )(x3)

    log_prob = logp3.reshape(N, C, H, W)   # free reshape, already NCHW order
    disp = disp3.reshape(N, H, W)          # free reshape
    # TODO(synk): the torch.isnan(log_prob.mean()) -> pdb.set_trace() debug
    # hook has no kernel equivalent and is intentionally omitted.
    return log_prob, disp


if __name__ == "__main__":
    # OrdinalRegressionLayer "parameters" (deterministic, in-script)
    ord_num = 8
    min_depth = 1.0
    max_depth = 10.0

    N, C, H, W = 2, ord_num, 16, 16
    key = jax.random.PRNGKey(0)
    x = jax.random.normal(key, (N, C, H, W), dtype=jnp.float32)

    log_prob, disp = ordinal_regression_forward(x, ord_num, max_depth, min_depth)
    jax.block_until_ready(log_prob)
    jax.block_until_ready(disp)

    # sanity check against pure-JAX reference
    labels = jnp.linspace(min_depth, max_depth, ord_num, dtype=jnp.float32)
    ref_logp = jax.nn.log_softmax(x, axis=1)
    ref_prob = jax.nn.softmax(x, axis=1)
    ref_depth = jnp.sum(ref_prob * labels[None, :, None, None], axis=1)
    ref_disp = 1.0 / ref_depth

    assert log_prob.shape == (N, C, H, W)
    assert disp.shape == (N, H, W)
    assert jnp.allclose(log_prob, ref_logp, atol=1e-5, rtol=1e-5)
    assert jnp.allclose(disp, ref_disp, atol=1e-5, rtol=1e-5)

    print("KERNEL_OK")
</pallas_src>

<mosaic_0001>
module attributes {stable_mosaic.version = 11 : i64} {
  func.func @_ordinal_kernel(%arg0: i32, %arg1: i32, %arg2: memref<1x8x256xf32, #tpu.memory_space<vmem>>, %arg3: memref<1x8x256xf32, #tpu.memory_space<vmem>>, %arg4: memref<1x1x256xf32, #tpu.memory_space<vmem>>) attributes {dimension_semantics = [#tpu.dimension_semantics<parallel>, #tpu.dimension_semantics<parallel>], iteration_bounds = array<i64: 2, 1>, scalar_prefetch = 0 : i64, scratch_operands = 0 : i64, tpu.core_type = #tpu.core_type<tc>, window_params = [{transform_indices = @transform_0, window_bounds = array<i64: 1, 8, 256>}, {transform_indices = @transform_1, window_bounds = array<i64: 1, 8, 256>}, {transform_indices = @transform_2, window_bounds = array<i64: 1, 1, 256>}]} {
    %c0 = arith.constant 0 : index
    %c0_0 = arith.constant 0 : index
    %c0_1 = arith.constant 0 : index
    %0 = vector.load %arg2[%c0, %c0_0, %c0_1] : memref<1x8x256xf32, #tpu.memory_space<vmem>>, vector<1x8x256xf32>
    %cst = arith.constant dense<0xFF800000> : vector<1x256xf32>
    %1 = vector.multi_reduction <maximumf>, %0, %cst [1] : vector<1x8x256xf32> to vector<1x256xf32>
    %2 = vector.shape_cast %1 : vector<1x256xf32> to vector<1x1x256xf32>
    %3 = vector.broadcast %2 : vector<1x1x256xf32> to vector<1x8x256xf32>
    %4 = arith.subf %0, %3 : vector<1x8x256xf32>
    %5 = math.exp %4 : vector<1x8x256xf32>
    %cst_2 = arith.constant dense<0.000000e+00> : vector<1x256xf32>
    %6 = vector.multi_reduction <add>, %5, %cst_2 [1] : vector<1x8x256xf32> to vector<1x256xf32>
    %7 = vector.shape_cast %6 : vector<1x256xf32> to vector<1x1x256xf32>
    %8 = math.log %7 : vector<1x1x256xf32>
    %9 = vector.broadcast %8 : vector<1x1x256xf32> to vector<1x8x256xf32>
    %10 = arith.subf %4, %9 : vector<1x8x256xf32>
    %c0_3 = arith.constant 0 : index
    %c0_4 = arith.constant 0 : index
    %c0_5 = arith.constant 0 : index
    %11 = vector.load %arg3[%c0_3, %c0_4, %c0_5] : memref<1x8x256xf32, #tpu.memory_space<vmem>>, vector<1x8x256xf32>
    tpu.vector_store %arg3[%c0_3, %c0_4, %c0_5], %10 {strides = array<i32>} : memref<1x8x256xf32, #tpu.memory_space<vmem>>, vector<1x8x256xf32>,
    %12 = tpu.iota {dimensions = array<i32: 1>} : vector<1x8x1xi32>
    %13 = arith.sitofp %12 : vector<1x8x1xi32> to vector<1x8x1xf32>
    %cst_6 = arith.constant 1.28571427 : f32
    %14 = vector.broadcast %cst_6 : f32 to vector<1x8x1xf32>
    %15 = arith.mulf %13, %14 : vector<1x8x1xf32>
    %cst_7 = arith.constant 1.000000e+00 : f32
    %16 = vector.broadcast %cst_7 : f32 to vector<1x8x1xf32>
    %17 = arith.addf %16, %15 : vector<1x8x1xf32>
    %18 = vector.broadcast %17 : vector<1x8x1xf32> to vector<1x8x256xf32>
    %19 = arith.mulf %5, %18 : vector<1x8x256xf32>
    %cst_8 = arith.constant dense<0.000000e+00> : vector<1x256xf32>
    %20 = vector.multi_reduction <add>, %19, %cst_8 [1] : vector<1x8x256xf32> to vector<1x256xf32>
    %21 = vector.shape_cast %20 : vector<1x256xf32> to vector<1x1x256xf32>
    %22 = arith.divf %7, %21 : vector<1x1x256xf32>
    %c0_9 = arith.constant 0 : index
    %c0_10 = arith.constant 0 : index
    %c0_11 = arith.constant 0 : index
    %23 = vector.load %arg4[%c0_9, %c0_10, %c0_11] : memref<1x1x256xf32, #tpu.memory_space<vmem>>, vector<1x1x256xf32>
    tpu.vector_store %arg4[%c0_9, %c0_10, %c0_11], %22 {strides = array<i32>} : memref<1x1x256xf32, #tpu.memory_space<vmem>>, vector<1x1x256xf32>,
    return
  }
  func.func @transform_0(%arg0: i32, %arg1: i32) -> (i32, i32, i32) {
    %c0_i32 = arith.constant 0 : i32
    %c0_i32_0 = arith.constant 0 : i32
    return %arg0, %c0_i32, %arg1 : i32, i32, i32
  }
  func.func @transform_1(%arg0: i32, %arg1: i32) -> (i32, i32, i32) {
    %c0_i32 = arith.constant 0 : i32
    %c0_i32_0 = arith.constant 0 : i32
    return %arg0, %c0_i32, %arg1 : i32, i32, i32
  }
  func.func @transform_2(%arg0: i32, %arg1: i32) -> (i32, i32, i32) {
    %c0_i32 = arith.constant 0 : i32
    %c0_i32_0 = arith.constant 0 : i32
    return %arg0, %c0_i32, %arg1 : i32, i32, i32
  }
}

</mosaic_0001>

<bundles_post_ra>
// kernel: tpu_custom_call.1
= control target key start
LH: loop header
LB: loop body
LE: loop exit
PB: predicated region body
PF: predicated region fallthrough
CT: control target
= control target key end

     0   :  { %8 = vsyncpa [#allocation3], 0  ;;  %s921_s0 = inlined_call_operand.hbm [shape: f32[2,8,256], index: 0, kind: input, shape index: {}]   ;;  %s922_s1 = inlined_call_operand.hbm [shape: f32[2,8,256], index: 1, kind: output, shape index: {0}]   ;;  %s923_s2 = inlined_call_operand.hbm [shape: f32[2,1,256], index: 2, kind: output, shape index: {1}]  }
   0x1   :  { %10 = vsyncpa [#allocation3 + $0x1], 0 }
   0x2   :  { %11 = vsyncpa [#allocation4], 0 }
   0x3   :  { %13 = vsyncpa [#allocation4 + $0x1], 0 }
   0x4   :  { %14 = vsyncpa [#allocation7], 0 }
   0x5   :  { %16 = vsyncpa [#allocation7 + $0x1], 0  ;;  %s704_s9 = smov 0   ;;  %s706_s10 = smov 0  }
   0x6   :  { %s708_s11 = smov 0   ;;  %s710_s12 = smov 0  }
   0x7   :  { %s712_s13 = smov 0   ;;  %s714_s14 = smov 0  }
   0x8 LB: > { %s437_s15 = sadd.s32 4294967295, %s683_s14   ;;  %s438_s16 = sadd.s32 4294967294, %s683_s14   ;;  %s683_s14 = sphi %s714_s14, %s22_s14   ;;  %s679_s13 = sphi %s712_s13, %s939_s13   ;;  %s675_s12 = sphi %s710_s12, %s938_s12   ;;  %s671_s11 = sphi %s708_s11, %s937_s11   ;;  %s667_s10 = sphi %s706_s10, %s936_s10   ;;  %s663_s9 = sphi %s704_s9, %s935_s9  }
   0x9   : > { %s34_s17 = sadd.s32 1, %s679_s13  ;;  %s43_s18 = sadd.s32 1, %s671_s11 }
   0xa   : > { %p36_p0 = scmp.ge.s32.totalorder %s34_s17, 2  ;;  %p50_p1 = scmp.ne.s32.totalorder %s671_s11, %s667_s10 }
   0xb   : > { %p51_p2 = scmp.eq.s32.totalorder %s683_s14, 0  ;;  %p56_p3 = scmp.ne.s32.totalorder %s667_s10, %s663_s9 }
   0xc   : > { %s941_s17 = smov (%p36_p0, %s34_s17), 0  ;;  %p57_p5 = scmp.eq.s32.totalorder %s437_s15, 0 }
   0xd   : > { %p745_p4 = por %p51_p2, %p50_p1  ;;  %s38_s20 = ssub.s32 %s679_s13, %s941_s17 }
   0xe   : > { %p82_p6 = scmp.eq.s32.totalorder %s437_s15, 1  ;;  %p41_p7 = scmp.eq.s32.totalorder %s38_s20, 0 }
   0xf   : > { %p751_p8 = por %p57_p5, %p56_p3  ;;  %p88_p10 = scmp.eq.s32.totalorder %s438_s16, 1 }
  0x10   : > { %p755_p9 = por %p82_p6, %p50_p1  ;;  %p476_p13 = scmp.lt.s32.totalorder %s683_s14, 2 }
  0x11   : > { %s760_s23 = scalar_select %p41_p7, %s671_s11, %s43_s18  }
  0x12   : > { %s927_s22 = scalar_select %p755_p9, 1, 0 }
  0x13   : > { %p762_p11 = por %p88_p10, %p56_p3  ;;  %s136_s25 = sand.u32 1, %s671_s11  }
  0x14   : > { %s441_s26 = sshll.u32 %s136_s25, 4  ;;  %s456_s27 = sshll.u32 %s679_s13, 8 }
  0x15   : > { %s928_s24 = scalar_select %p762_p11, 1, 0 }
  0x16   : > { %s773_s30 = scalar_lea.hbm %s921_s0, %s456_s27  ;;  %s140_s3 = scalar_lea.vmem [#allocation2], %s441_s26 }
  0x17   : > { %s150_s4 = sshll.u32 %s140_s3, 4  ;;  %p779_p0 = pnand %p476_p13, %p745_p4  ;;  %s775_s4 = int_to_ptr.vmem [resolvable:$true] %s150_s4 }
  0x18   : > { %s137_s6 = scalar_lea.sflag [#allocation3], %s136_s25  ;;  %s539_s7 = scalar_lea.hbm %s773_s30, 256 }
  0x19   : > { %p540_p3 = scmp.ne.s32.totalorder %s773_s30, %s539_s7  ;;  %p541_p5 = pneg %p779_p0 }
  0x1a   : > { %s544_s16 = scalar_lea.hbm %s921_s0, 512  ;;  %p545_p4 = scmp.lt.u32.totalorder %s773_s30, %s921_s0 }
  0x1b   : > { %p542_p6 = pnand %p541_p5, %p540_p3  ;;  %p546_p10 = scmp.lt.u32.totalorder %s544_s16, %s539_s7 }
  0x1c   : > { %p548_p12 = scmp.lt.u32.totalorder %s539_s7, %s773_s30 }
  0x1d   : > { %p543_p7 = pneg %p542_p6  ;;  %p547_p13 = por %p546_p10, %p545_p4 }
  0x1f   : > { %p549_p1 = por %p548_p12, %p547_p13 }
  0x21   : > { %p550_p2 = pnand %p549_p1, %p543_p7 }
  0x23   : > { %553 = shalt.err (!%p550_p2)
}
  0x24   : > { %s554_s20 = scalar_lea.vmem %s775_s4, 256  ;;  %s685_s25 = smov [#allocation2]  }
  0x25   : > { %p555_p3 = scmp.ne.s32.totalorder %s775_s4, %s554_s20  ;;  %s559_s26 = sshll.u32 %s685_s25, 4  ;;  %s560_s26 = int_to_ptr.vmem [resolvable:$false] %s559_s26 }
  0x26   : > { %s561_s27 = scalar_lea.vmem %s560_s26, 512  ;;  %p562_p9 = scmp.lt.s32.totalorder %s775_s4, %s560_s26 }
  0x27   : > { %p557_p6 = pnand %p555_p3, %p541_p5  ;;  %p563_p4 = scmp.lt.s32.totalorder %s561_s27, %s554_s20 }
  0x29   : > { %p558_p11 = pneg %p557_p6  ;;  %p564_p10 = por %p563_p4, %p562_p9 }
  0x2b   : > { %p565_p12 = pnand %p564_p10, %p558_p11 }
  0x2d   : > { %568 = shalt.err (!%p565_p12)
}
  0x2e   : > { %468 = dma.hbm_to_vmem [thread:$0]  (!%p779_p0), %s773_s30, 256, %s775_s4, %s137_s6  }
  0x2f   : > { %p930_p1 = scmp.lt.s32.totalorder %s683_s14, 3  ;;  %p931_p2 = scmp.ge.s32.totalorder %s683_s14, 1 }
  0x31   : > { %p156_p5 = pnand %p931_p2, %p930_p1 }
  0x32   : > { %s815_s28 = sand.u32 (!%p156_p5), 1, %s667_s10  }
  0x33   : > { %159 = sbr.rel (%p156_p5) target bundleno = 152 (0x98), region = 24  ;;  %s445_s29 = sshll.u32 (!%p156_p5), %s815_s28, 4 }
  0x34   : > { %s162_s3 = scalar_lea.sflag (!%p156_p5), [#allocation3], %s815_s28  ;;  %s165_s5 = scalar_lea.vmem (!%p156_p5), [#allocation2], %s445_s29 }
  0x3a   : > { %650 = dma.done.wait (%p751_p8), %s162_s3, 256  }
  0x3b   : > { %652 = vsyncadd (%p751_p8), %s162_s3, 4294967040  ;;  %v194_v0 = vld [vmem:[%s165_s5] sm:$0xff]  ;;  %v195_v1 = vld [vmem:[%s165_s5 + $0x8] sm:$0xff]  ;;  %v234_v10 = vlaneseq  ;;  %v686_v51 = vmov 1966171168   ;;  %s183_s21 = scalar_lea.vmem [#allocation5], %s445_s29 }
  0x3c   : > { %v196_v2 = vrot.slane %v194_v0, 4  ;;  %v202_v3 = vrot.slane %v195_v1, 4  ;;  %v261_v52 = vunpack.c.l.s4 %v686_v51  ;;  %s302_s30 = sshll.u32 %s183_s21, 4  ;;  %s447_s4 = sshll.u32 %s815_s28, 1  ;;  %s830_s30 = int_to_ptr.vmem [resolvable:$true] %s302_s30 }
  0x3d   : > { %v235_v15 = vshrl.u32 %v234_v10, 7  ;;  %s457_s6 = sshll.u32 %s675_s12, 8  ;;  %s837_s16 = scalar_lea.vmem [#allocation6], %s447_s4 }
  0x3e   : > { %v197_v4 = vmax.f32 %v194_v0, %v196_v2  ;;  %v203_v5 = vmax.f32 %v195_v1, %v202_v3  ;;  %v262_v54 = vunpack.c.0.s8 %v261_v52  ;;  %s835_s15 = scalar_lea.hbm %s922_s1, %s457_s6  ;;  %s318_s18 = sshll.u32 %s837_s16, 4  ;;  %s866_s18 = int_to_ptr.vmem [resolvable:$true] %s318_s18 }
  0x3f   : > { %v236_v20 = vcvt.s32.f32 %v235_v15  ;;  %s458_s19 = sshll.u32 %s675_s12, 5  ;;  %s281_s20 = scalar_lea.sflag [#allocation4], %s815_s28 }
  0x40   : > { %v198_v6 = vrot.slane %v197_v4, 2  ;;  %v204_v7 = vrot.slane %v203_v5, 2  ;;  %s569_s25 = scalar_lea.vmem %s830_s30, 256  ;;  %p932_p9 = scmp.ne.s32.totalorder %s927_s22, 0 }
  0x41   : > { %v237_v21 = vmul.f32 1.2857143, %v236_v20  ;;  %p570_p8 = scmp.ne.s32.totalorder %s830_s30, %s569_s25  ;;  %s687_s26 = smov [#allocation5]  }
  0x42   : > { %v199_v8 = vmax.f32 %v197_v4, %v198_v6  ;;  %v205_v9 = vmax.f32 %v203_v5, %v204_v7  ;;  %s573_s27 = sshll.u32 %s687_s26, 4  ;;  %s574_s27 = int_to_ptr.vmem [resolvable:$false] %s573_s27 }
  0x43   : > { %v238_v22 = vadd.f32 1.0, %v237_v21  ;;  %p571_p11 = pnand %p570_p8, %p932_p9  ;;  %s575_s29 = scalar_lea.vmem %s574_s27, 512 }
  0x44   : > { %v200_v11 = vrot.slane %v199_v8, 1  ;;  %v206_v12 = vrot.slane %v205_v9, 1  ;;  %p576_p7 = scmp.lt.s32.totalorder %s830_s30, %s574_s27  ;;  %p577_p13 = scmp.lt.s32.totalorder %s575_s29, %s569_s25 }
  0x45   : > { %p572_p0 = pneg %p571_p11 }
  0x46   : > { %v201_v13 = vmax.f32 %v199_v8, %v200_v11  ;;  %v207_v14 = vmax.f32 %v205_v9, %v206_v12  ;;  %p578_p3 = por %p577_p13, %p576_p7 }
  0x48   : > { %v208_v16 = vsub.f32 %v194_v0, %v201_v13  ;;  %v209_v17 = vsub.f32 %v195_v1, %v207_v14  ;;  %v265_v0 = vsub.s32 %v262_v54, %v235_v15  ;;  %p579_p6 = pnand %p578_p3, %p572_p0 }
  0x4a   : > { %v210_v18 = vmul.f32 1.442695, %v208_v16  ;;  %v212_v19 = vmul.f32 1.442695, %v209_v17 }
  0x4c   : > { %527 = vpow2.f32 %v210_v18 }
  0x4d   : > { %529 = vpow2.f32 %v212_v19 }
  0x56   : > { %v528_v23 = vpop.eup %527 }
  0x57   : > { %v530_v24 = vpop.eup %529  ;;  %v214_v25 = vrot.slane %v528_v23, 4  ;;  %v239_v26 = vmul.f32 %v528_v23, %v238_v22 }
  0x58   : > { %v220_v27 = vrot.slane %v530_v24, 4  ;;  %v240_v28 = vmul.f32 %v530_v24, %v238_v22 }
  0x59   : > { %v215_v29 = vadd.f32 %v528_v23, %v214_v25  ;;  %v241_v30 = vrot.slane %v239_v26, 4 }
  0x5a   : > { %v221_v31 = vadd.f32 %v530_v24, %v220_v27  ;;  %v247_v32 = vrot.slane %v240_v28, 4 }
  0x5b   : > { %v216_v33 = vrot.slane %v215_v29, 2  ;;  %v242_v34 = vadd.f32 %v241_v30, %v239_v26 }
  0x5c   : > { %v222_v35 = vrot.slane %v221_v31, 2  ;;  %v248_v36 = vadd.f32 %v247_v32, %v240_v28 }
  0x5d   : > { %v217_v37 = vadd.f32 %v216_v33, %v215_v29  ;;  %v243_v38 = vrot.slane %v242_v34, 2 }
  0x5e   : > { %v223_v39 = vadd.f32 %v222_v35, %v221_v31  ;;  %v249_v40 = vrot.slane %v248_v36, 2 }
  0x5f   : > { %v218_v41 = vrot.slane %v217_v37, 1  ;;  %v244_v42 = vadd.f32 %v243_v38, %v242_v34 }
  0x60   : > { %v224_v43 = vrot.slane %v223_v39, 1  ;;  %v250_v44 = vadd.f32 %v249_v40, %v248_v36 }
  0x61   : > { %v219_v45 = vadd.f32 %v218_v41, %v217_v37  ;;  %v245_v46 = vrot.slane %v244_v42, 1 }
  0x62   : > { %v225_v47 = vadd.f32 %v224_v43, %v223_v39  ;;  %v251_v48 = vrot.slane %v250_v44, 1 }
  0x63   : > { %531 = vlog2.f32 %v219_v45  ;;  %v246_v49 = vadd.f32 %v245_v46, %v244_v42 }
  0x64   : > { %533 = vlog2.f32 %v225_v47  ;;  %v252_v50 = vadd.f32 %v251_v48, %v250_v44 }
  0x65   : > { %535 = vrcp.f32 %v246_v49 }
  0x66   : > { %537 = vrcp.f32 %v252_v50 }
  0x6d   : > { %v532_v53 = vpop.eup %531 }
  0x6e   : > { %v534_v55 = vpop.eup %533  ;;  %v227_v56 = vmul.f32 0.6931472, %v532_v53 }
  0x6f   : > { %v536_v57 = vpop.eup %535  ;;  %v229_v58 = vmul.f32 0.6931472, %v534_v55 }
  0x70   : > { %v538_v59 = vpop.eup %537  ;;  %v230_v60 = vsub.f32 %v208_v16, %v227_v56  ;;  %v254_v61 = vmul.f32 %v536_v57, %v219_v45 }
  0x71   : > { %v231_v62 = vsub.f32 %v209_v17, %v229_v58  ;;  %v256_v63 = vmul.f32 %v538_v59, %v225_v47 }
  0x72   : > { %232 = vst [vmem:[%s183_s21] sm:$0xff] %v230_v60 }
  0x73   : > { %233 = vst [vmem:[%s183_s21 + $0x8] sm:$0xff] %v231_v62  ;;  %v259_v1 = vcombine.low %v254_v61, %v256_v63 }
  0x74   : > { %582 = shalt.err (!%p579_p6)
}
  0x75   : > { %s583_s3 = scalar_lea.hbm %s835_s15, 256  ;;  %s587_s4 = scalar_lea.hbm %s922_s1, 512 }
  0x76   : > { %p584_p4 = scmp.ne.s32.totalorder %s835_s15, %s583_s3  ;;  %p588_p1 = scmp.lt.u32.totalorder %s835_s15, %s922_s1 }
  0x77   : > { %p589_p2 = scmp.lt.u32.totalorder %s587_s4, %s583_s3  ;;  %p591_p8 = scmp.lt.u32.totalorder %s583_s3, %s835_s15 }
  0x78   : > { %p585_p10 = pnand %p584_p4, %p932_p9 }
  0x79   : > { %p590_p5 = por %p589_p2, %p588_p1 }
  0x7a   : > { %p586_p12 = pneg %p585_p10 }
  0x7b   : > { %p592_p11 = por %p591_p8, %p590_p5 }
  0x7d   : > { %p593_p0 = pnand %p592_p11, %p586_p12 }
  0x7f   : > { %596 = shalt.err (!%p593_p0)
}
  0x80   : > { %461 = dma.vmem_to_hbm [thread:$0]  (%p932_p9), %s830_s30, 256, %s835_s15, %s281_s20   ;;  %v266_v2 = vrot.slane %v259_v1, %v265_v0  ;;  %vm277_vm0 = vcmp.lt.s32.totalorder %v234_v10, 256 }
  0x81   : > { %s873_s26 = scalar_lea.hbm %s923_s2, %s458_s19  ;;  %s286_s27 = scalar_lea.sflag [#allocation7], %s815_s28 }
  0x82   : > { %v273_v3 = vrot.slane %v266_v2, %v265_v0  ;;  %s597_s29 = scalar_lea.vmem %s866_s18, 32  ;;  %s688_s30 = smov [#allocation6]  }
  0x83   : > { %p598_p7 = scmp.ne.s32.totalorder %s866_s18, %s597_s29  ;;  %s601_s15 = sshll.u32 %s688_s30, 4  ;;  %s602_s15 = int_to_ptr.vmem [resolvable:$false] %s601_s15 }
  0x84   : > { %279 = vst.msk [vmem:[%s837_s16] sm:$0x3] %vm277_vm0, %v273_v3  ;;  %s603_s20 = scalar_lea.vmem %s602_s15, 64  ;;  %p604_p6 = scmp.lt.s32.totalorder %s866_s18, %s602_s15 }
  0x85   : > { %p599_p13 = pnand %p598_p7, %p932_p9  ;;  %p605_p4 = scmp.lt.s32.totalorder %s603_s20, %s597_s29 }
  0x87   : > { %p600_p3 = pneg %p599_p13  ;;  %p606_p10 = por %p605_p4, %p604_p6 }
  0x89   : > { %p607_p12 = pnand %p606_p10, %p600_p3 }
  0x8b   : > { %610 = shalt.err (!%p607_p12)
}
  0x8c   : > { %s611_s12 = scalar_lea.hbm %s873_s26, 32  ;;  %s615_s19 = scalar_lea.hbm %s923_s2, 64 }
  0x8d   : > { %p612_p1 = scmp.ne.s32.totalorder %s873_s26, %s611_s12  ;;  %p616_p8 = scmp.lt.u32.totalorder %s873_s26, %s923_s2 }
  0x8e   : > { %p617_p11 = scmp.lt.u32.totalorder %s615_s19, %s611_s12  ;;  %p619_p7 = scmp.lt.u32.totalorder %s611_s12, %s873_s26 }
  0x8f   : > { %p613_p2 = pnand %p612_p1, %p932_p9 }
  0x90   : > { %p618_p0 = por %p617_p11, %p616_p8 }
  0x91   : > { %p614_p5 = pneg %p613_p2 }
  0x92   : > { %p620_p13 = por %p619_p7, %p618_p0 }
  0x94   : > { %p621_p3 = pnand %p620_p13, %p614_p5 }
  0x96   : > { %624 = shalt.err (!%p621_p3)
}
  0x97   : > { %462 = dma.vmem_to_hbm [thread:$0]  (%p932_p9), %s866_s18, 32, %s873_s26, %s286_s27  }
  0x98 PF: > { %s330_s21 = sand.u32 1, %s663_s9   ;;  %p933_p6 = scmp.ne.s32.totalorder %s928_s24, 0 }
  0x99   : > { %p934_p4 = scmp.ge.s32.totalorder %s683_s14, 2  ;;  %s331_s4 = scalar_lea.sflag [#allocation4], %s330_s21 }
  0x9b   : > { %p470_p10 = pnand %p934_p4, %p933_p6 }
  0x9d   : > { %654 = dma.done.wait (!%p470_p10), %s331_s4, 256  }
  0x9e   : > { %656 = vsyncadd (!%p470_p10), %s331_s4, 4294967040  ;;  %s340_s6 = scalar_lea.sflag [#allocation7], %s330_s21 }
  0x9f   : > { %658 = dma.done.wait (!%p470_p10), %s340_s6, 32  }
  0xa0   : > { %660 = vsyncadd (!%p470_p10), %s340_s6, 4294967264  ;;  %s22_s14 = sadd.s32 1, %s683_s14   ;;  %s935_s9 = smov %s667_s10 }
  0xa1   : > { %p19_p12 = scmp.ge.s32.totalorder %s22_s14, 4   ;;  %s936_s10 = smov %s671_s11 }
  0xa2   : > { %s937_s11 = smov %s760_s23  ;;  %s938_s12 = smov %s679_s13 }
  0xa3   : > { %s939_s13 = smov %s941_s17  ;;  %21 = sbr.rel (!%p19_p12) target bundleno = 8 (0x8), region = 86 }
  0xaa   :  { %345 = vsyncpa [#allocation3], 1 }
  0xab   :  { %347 = vsyncpa [#allocation3 + $0x1], 1 }
  0xac   :  { %348 = vsyncpa [#allocation4], 1 }
  0xad   :  { %350 = vsyncpa [#allocation4 + $0x1], 1 }
  0xae   :  { %351 = vsyncpa [#allocation7], 1 }
  0xaf   :  { %353 = vsyncpa [#allocation7 + $0x1], 1 }

</bundles_post_ra>
